<compile_context>
chip_gen: v7x
topology: tpu7x:2x2x1
jax: 0.10.0
libtpu: 0.0.40
codegen_flags: <defaults>
</compile_context>

<pallas_src>
import jax
import jax.numpy as jnp
from jax.experimental import pallas as pl
from jax.experimental.pallas import tpu as pltpu


def _round_up(x, m):
    return ((x + m - 1) // m) * m


def _rbf_kernel(x_ref, ct2_ref, csq_ref, nbeta_ref, wt_ref, b_ref, o_ref,
                acc_ref, xsq_ref):
    # x_ref:     (TB, Dp)   batch tile of inputs (f32)
    # ct2_ref:   (Dp, TN)   -2 * centers^T chunk (f32)
    # csq_ref:   (1, TN)    ||c||^2 per center of this chunk (f32)
    # nbeta_ref: (1, TN)    -beta per center of this chunk (f32)
    # wt_ref:    (TN, Op)   linear weight chunk, transposed (bf16)
    # b_ref:     (1, Op)    linear bias (f32)
    # o_ref:     (TB, Op)   output tile (f32, lane-dense)
    # acc_ref:   (TB, Op)   f32 accumulator scratch
    # xsq_ref:   (TB, 1)    per-row ||x||^2 scratch
    k = pl.program_id(1)

    @pl.when(k == 0)
    def _init():
        x = x_ref[...]
        xsq_ref[...] = jnp.sum(x * x, axis=1, keepdims=True)
        acc_ref[...] = jnp.zeros_like(acc_ref)

    # MXU: -2 * x @ c^T for this center chunk -> (TB, TN)
    cross2 = jnp.dot(x_ref[...], ct2_ref[...], preferred_element_type=jnp.float32)

    # Squared distance in f32, clamped against cancellation.
    d2 = jnp.maximum(xsq_ref[...] + cross2 + csq_ref[...], 0.0)

    # RBF activation; exp kept in f32 (EUP slot) for fidelity to the PyTorch module.
    # TODO(synk): if profiling shows the kernel is EUP-bound on v6e/v7x, evaluate a
    # bf16 exp path there (keep f32 on v5e which has no bf16 EUP/VPU).
    phi = jnp.exp(nbeta_ref[...] * d2)

    # MXU: phi @ W^T chunk in bf16 with f32 accumulation into the scratch.
    acc_ref[...] += jnp.dot(phi.astype(jnp.bfloat16), wt_ref[...],
                            preferred_element_type=jnp.float32)

    @pl.when(k == pl.num_programs(1) - 1)
    def _finalize():
        o_ref[...] = acc_ref[...] + b_ref[...]


def rbf_forward(x, centers, beta, weight, bias, *, max_tile_b=512):
    """x: (B, D), centers: (N, D), beta: (N,), weight: (out_dim, N), bias: (out_dim,)."""
    B, D = x.shape
    N = centers.shape[0]
    out_dim = weight.shape[0]
    f32 = jnp.float32
    LANE = 128

    # --- feature axis: zero-pad to aligned width (multiple of 8, of 128 if large) ---
    Dp = _round_up(D, LANE) if D >= LANE else _round_up(D, 8)

    # --- centers axis: lane-full chunks; prefer 256/512-wide chunks for the
    #     2x256 MXUs of v6e/v7x when the padded N allows; 128 saturates v5e. ---
    n_pad = _round_up(N, LANE)
    if n_pad % 512 == 0:
        tile_n = 512
    elif n_pad % 256 == 0:
        tile_n = 256
    else:
        tile_n = 128
    num_n_tiles = n_pad // tile_n

    # --- output axis: lane-dense unmasked stores ---
    out_pad = _round_up(out_dim, LANE)

    # --- batch axis: balanced tiles; force >= 2 tiles (both v7x TCs) when possible ---
    num_b_tiles = max(pl.cdiv(B, max_tile_b), 1)
    if num_b_tiles < 2 and B > 8:
        num_b_tiles = 2
    tile_b = _round_up(pl.cdiv(B, num_b_tiles), 8)
    b_pad = _round_up(B, tile_b)
    num_b_tiles = b_pad // tile_b

    # --- wrapper-side padding.  Padded center columns give phi = exp(0) = 1 but
    #     their W^T rows are zero; padded output columns have zero weight/bias, and
    #     padded feature columns are zero in both x and centers -> semantics unchanged.
    c32 = centers.astype(f32)
    x_p = jnp.zeros((b_pad, Dp), f32).at[:B, :D].set(x.astype(f32))
    ct2_p = jnp.zeros((Dp, n_pad), f32).at[:D, :N].set(-2.0 * c32.T)
    csq_p = jnp.zeros((1, n_pad), f32).at[:, :N].set(jnp.sum(c32 * c32, axis=1)[None, :])
    nbeta_p = jnp.zeros((1, n_pad), f32).at[:, :N].set(-beta.astype(f32)[None, :])
    wt_p = jnp.zeros((n_pad, out_pad), jnp.bfloat16).at[:N, :out_dim].set(
        weight.T.astype(jnp.bfloat16))
    b_p = jnp.zeros((1, out_pad), f32).at[:, :out_dim].set(bias.astype(f32)[None, :])

    # --- per-generation VMEM budget ---
    try:
        phys_vmem = int(pltpu.get_tpu_info().vmem_capacity_bytes)
    except Exception:
        phys_vmem = 64 * 1024 * 1024           # v7x per-TC value; conservative default
    vmem_cap = (phys_vmem * 3) // 4            # headroom for Mosaic internals

    k_bufs = 1 if num_n_tiles == 1 else 2
    vmem_needed = (
        2 * tile_b * Dp * 4                    # x tile (double-buffered)
        + k_bufs * Dp * tile_n * 4             # -2*centers^T chunk
        + k_bufs * 2 * 8 * tile_n * 4          # ||c||^2 + (-beta) chunks (sublane-padded)
        + k_bufs * tile_n * out_pad * 2        # W^T chunk (bf16)
        + 8 * out_pad * 4                      # bias
        + 2 * tile_b * out_pad * 4             # output tile (double-buffered)
        + tile_b * out_pad * 4                 # f32 accumulator scratch
        + tile_b * 8 * 4                       # ||x||^2 scratch
        + 3 * tile_b * tile_n * 4              # cross / d2 / phi temporaries
    )
    vmem_limit = int(min(max(2 * vmem_needed, 16 * 1024 * 1024), vmem_cap))

    flops = (2 * b_pad * n_pad * Dp            # x @ (-2 c^T)
             + 2 * b_pad * n_pad * out_pad     # phi @ W^T
             + 4 * b_pad * n_pad)              # VPU elementwise
    bytes_accessed = (4 * (x_p.size + ct2_p.size + csq_p.size + nbeta_p.size + b_p.size)
                      + 2 * wt_p.size
                      + 4 * b_pad * out_pad)

    grid = (num_b_tiles, num_n_tiles)

    def _call(use_buffer_hints):
        if use_buffer_hints:
            # Single N chunk -> center-side operands are grid-invariant: single-buffer
            # them (no pipelining benefit, halves their VMEM footprint).  The bias is
            # always grid-invariant.
            k_mode = pl.Buffered(1) if num_n_tiles == 1 else pl.Buffered(2)
            in_specs = [
                pl.BlockSpec((tile_b, Dp), lambda i, k: (i, 0)),
                pl.BlockSpec((Dp, tile_n), lambda i, k: (0, k), pipeline_mode=k_mode),
                pl.BlockSpec((1, tile_n), lambda i, k: (0, k), pipeline_mode=k_mode),
                pl.BlockSpec((1, tile_n), lambda i, k: (0, k), pipeline_mode=k_mode),
                pl.BlockSpec((tile_n, out_pad), lambda i, k: (k, 0), pipeline_mode=k_mode),
                pl.BlockSpec((1, out_pad), lambda i, k: (0, 0),
                             pipeline_mode=pl.Buffered(1)),
            ]
        else:
            in_specs = [
                pl.BlockSpec((tile_b, Dp), lambda i, k: (i, 0)),
                pl.BlockSpec((Dp, tile_n), lambda i, k: (0, k)),
                pl.BlockSpec((1, tile_n), lambda i, k: (0, k)),
                pl.BlockSpec((1, tile_n), lambda i, k: (0, k)),
                pl.BlockSpec((tile_n, out_pad), lambda i, k: (k, 0)),
                pl.BlockSpec((1, out_pad), lambda i, k: (0, 0)),
            ]

        return pl.pallas_call(
            _rbf_kernel,
            out_shape=jax.ShapeDtypeStruct((b_pad, out_pad), f32),
            grid_spec=pltpu.PrefetchScalarGridSpec(
                num_scalar_prefetch=0,
                grid=grid,
                in_specs=in_specs,
                out_specs=pl.BlockSpec((tile_b, out_pad), lambda i, k: (i, 0)),
                scratch_shapes=[
                    pltpu.VMEM((tile_b, out_pad), jnp.float32),   # accumulator
                    pltpu.VMEM((tile_b, 1), jnp.float32),          # ||x||^2
                ],
            ),
            compiler_params=pltpu.CompilerParams(
                dimension_semantics=("parallel", "arbitrary"),
                vmem_limit_bytes=vmem_limit,
            ),
            cost_estimate=pl.CostEstimate(
                flops=flops,
                transcendentals=b_pad * n_pad,
                bytes_accessed=bytes_accessed,
            ),
        )(x_p, ct2_p, csq_p, nbeta_p, wt_p, b_p)

    try:
        out_padded = _call(True)
    except Exception:
        # Fallback if pipeline_mode buffering hints are unsupported by this JAX build.
        out_padded = _call(False)

    return out_padded[:B, :out_dim]


def rbf_reference(x, centers, beta, weight, bias):
    d2 = jnp.sum((x[:, None, :] - centers[None, :, :]) ** 2, axis=2)  # (B, N)
    phi = jnp.exp(-beta[None, :] * d2)
    return phi @ weight.T + bias[None, :]


if __name__ == "__main__":
    key = jax.random.PRNGKey(0)
    k_x, k_c, k_w, k_b = jax.random.split(key, 4)

    B, D, N, OUT = 8, 4, 32, 8  # batch, in_features, num_centers, out_dim

    x = jax.random.normal(k_x, (B, D), dtype=jnp.float32)
    centers = jax.random.normal(k_c, (N, D), dtype=jnp.float32)
    beta = jnp.ones((N,), dtype=jnp.float32)                            # nn.Parameter(torch.ones(N))
    weight = jax.random.normal(k_w, (OUT, N), dtype=jnp.float32) * 0.1  # nn.Linear(N, OUT).weight
    bias = jax.random.normal(k_b, (OUT,), dtype=jnp.float32) * 0.1      # nn.Linear(N, OUT).bias

    out = rbf_forward(x, centers, beta, weight, bias)
    out = jax.block_until_ready(out)

    ref = rbf_reference(x, centers, beta, weight, bias)
    assert out.shape == (B, OUT)
    # phi @ W^T runs in bf16 (f32 accumulation) -> slightly looser tolerance vs f32 ref.
    assert jnp.allclose(out, ref, atol=2e-2, rtol=2e-2), "mismatch vs reference"

    print("KERNEL_OK")
</pallas_src>

<mosaic_0001>
module attributes {stable_mosaic.version = 11 : i64} {
  func.func @_rbf_kernel(%arg0: i32, %arg1: i32, %arg2: memref<8x8xf32, #tpu.memory_space<vmem>>, %arg3: memref<8x128xf32, #tpu.memory_space<vmem>>, %arg4: memref<1x128xf32, #tpu.memory_space<vmem>>, %arg5: memref<1x128xf32, #tpu.memory_space<vmem>>, %arg6: memref<128x128xbf16, #tpu.memory_space<vmem>>, %arg7: memref<1x128xf32, #tpu.memory_space<vmem>>, %arg8: memref<8x128xf32, #tpu.memory_space<vmem>>, %arg9: memref<8x128xf32, #tpu.memory_space<vmem>>, %arg10: memref<8x1xf32, #tpu.memory_space<vmem>>) attributes {dimension_semantics = [#tpu.dimension_semantics<parallel>, #tpu.dimension_semantics<arbitrary>], iteration_bounds = array<i64: 1, 1>, scalar_prefetch = 0 : i64, scratch_operands = 2 : i64, tpu.core_type = #tpu.core_type<tc>, window_params = [{transform_indices = @transform_0, window_bounds = array<i64: 8, 8>}, {pipeline_mode = #tpu.pipeline_mode<synchronous>, transform_indices = @transform_1, window_bounds = array<i64: 8, 128>}, {pipeline_mode = #tpu.pipeline_mode<synchronous>, transform_indices = @transform_2, window_bounds = array<i64: 1, 128>}, {pipeline_mode = #tpu.pipeline_mode<synchronous>, transform_indices = @transform_3, window_bounds = array<i64: 1, 128>}, {pipeline_mode = #tpu.pipeline_mode<synchronous>, transform_indices = @transform_4, window_bounds = array<i64: 128, 128>}, {pipeline_mode = #tpu.pipeline_mode<synchronous>, transform_indices = @transform_5, window_bounds = array<i64: 1, 128>}, {transform_indices = @transform_6, window_bounds = array<i64: 8, 128>}]} {
    %c0_i32 = arith.constant 0 : i32
    %0 = arith.cmpi eq, %arg1, %c0_i32 : i32
    %1 = arith.extui %0 : i1 to i32
    %c0_i32_0 = arith.constant 0 : i32
    %2 = arith.cmpi ne, %1, %c0_i32_0 : i32
    scf.if %2 {
      %c0_20 = arith.constant 0 : index
      %c0_21 = arith.constant 0 : index
      %27 = vector.load %arg2[%c0_20, %c0_21] : memref<8x8xf32, #tpu.memory_space<vmem>>, vector<8x8xf32>
      %28 = arith.mulf %27, %27 : vector<8x8xf32>
      %cst_22 = arith.constant dense<0.000000e+00> : vector<8xf32>
      %29 = vector.multi_reduction <add>, %28, %cst_22 [1] : vector<8x8xf32> to vector<8xf32>
      %30 = vector.shape_cast %29 : vector<8xf32> to vector<8x1xf32>
      %c0_23 = arith.constant 0 : index
      %c0_24 = arith.constant 0 : index
      %31 = vector.load %arg10[%c0_23, %c0_24] : memref<8x1xf32, #tpu.memory_space<vmem>>, vector<8x1xf32>
      tpu.vector_store %arg10[%c0_23, %c0_24], %30 {strides = array<i32>} : memref<8x1xf32, #tpu.memory_space<vmem>>, vector<8x1xf32>,
      %cst_25 = arith.constant 0.000000e+00 : f32
      %32 = vector.broadcast %cst_25 : f32 to vector<8x128xf32>
      %c0_26 = arith.constant 0 : index
      %c0_27 = arith.constant 0 : index
      %33 = vector.load %arg9[%c0_26, %c0_27] : memref<8x128xf32, #tpu.memory_space<vmem>>, vector<8x128xf32>
      tpu.vector_store %arg9[%c0_26, %c0_27], %32 {strides = array<i32>} : memref<8x128xf32, #tpu.memory_space<vmem>>, vector<8x128xf32>,
    } else {
    }
    %c0 = arith.constant 0 : index
    %c0_1 = arith.constant 0 : index
    %3 = vector.load %arg2[%c0, %c0_1] : memref<8x8xf32, #tpu.memory_space<vmem>>, vector<8x8xf32>
    %c0_2 = arith.constant 0 : index
    %c0_3 = arith.constant 0 : index
    %4 = vector.load %arg3[%c0_2, %c0_3] : memref<8x128xf32, #tpu.memory_space<vmem>>, vector<8x128xf32>
    %cst = arith.constant dense<0.000000e+00> : vector<8x128xf32>
    %5 = tpu.matmul %3, %4, %cst {dimension_numbers = #tpu.dot_dimension_numbers<[1], [0], [0], [1], [0, 0, 1, 1], [], []>} : vector<8x8xf32>, vector<8x128xf32>, vector<8x128xf32> -> vector<8x128xf32>
    %c0_4 = arith.constant 0 : index
    %c0_5 = arith.constant 0 : index
    %6 = vector.load %arg10[%c0_4, %c0_5] : memref<8x1xf32, #tpu.memory_space<vmem>>, vector<8x1xf32>
    %7 = vector.broadcast %6 : vector<8x1xf32> to vector<8x128xf32>
    %8 = arith.addf %7, %5 : vector<8x128xf32>
    %c0_6 = arith.constant 0 : index
    %c0_7 = arith.constant 0 : index
    %9 = vector.load %arg4[%c0_6, %c0_7] : memref<1x128xf32, #tpu.memory_space<vmem>>, vector<1x128xf32>
    %10 = vector.broadcast %9 : vector<1x128xf32> to vector<8x128xf32>
    %11 = arith.addf %8, %10 : vector<8x128xf32>
    %cst_8 = arith.constant 0.000000e+00 : f32
    %12 = vector.broadcast %cst_8 : f32 to vector<8x128xf32>
    %13 = arith.maximumf %11, %12 : vector<8x128xf32>
    %c0_9 = arith.constant 0 : index
    %c0_10 = arith.constant 0 : index
    %14 = vector.load %arg5[%c0_9, %c0_10] : memref<1x128xf32, #tpu.memory_space<vmem>>, vector<1x128xf32>
    %15 = vector.broadcast %14 : vector<1x128xf32> to vector<8x128xf32>
    %16 = arith.mulf %15, %13 : vector<8x128xf32>
    %17 = math.exp %16 : vector<8x128xf32>
    %c0_11 = arith.constant 0 : index
    %c0_12 = arith.constant 0 : index
    %18 = vector.load %arg9[%c0_11, %c0_12] : memref<8x128xf32, #tpu.memory_space<vmem>>, vector<8x128xf32>
    %19 = arith.truncf %17 : vector<8x128xf32> to vector<8x128xbf16>
    %c0_13 = arith.constant 0 : index
    %c0_14 = arith.constant 0 : index
    %20 = vector.load %arg6[%c0_13, %c0_14] : memref<128x128xbf16, #tpu.memory_space<vmem>>, vector<128x128xbf16>
    %cst_15 = arith.constant dense<0.000000e+00> : vector<8x128xf32>
    %21 = tpu.matmul %19, %20, %cst_15 {dimension_numbers = #tpu.dot_dimension_numbers<[1], [0], [0], [1], [0, 0, 1, 1], [], []>} : vector<8x128xbf16>, vector<128x128xbf16>, vector<8x128xf32> -> vector<8x128xf32>
    %22 = arith.addf %18, %21 : vector<8x128xf32>
    %c0_16 = arith.constant 0 : index
    %c0_17 = arith.constant 0 : index
    %23 = vector.load %arg9[%c0_16, %c0_17] : memref<8x128xf32, #tpu.memory_space<vmem>>, vector<8x128xf32>
    tpu.vector_store %arg9[%c0_16, %c0_17], %22 {strides = array<i32>} : memref<8x128xf32, #tpu.memory_space<vmem>>, vector<8x128xf32>,
    %c0_i32_18 = arith.constant 0 : i32
    %24 = arith.cmpi eq, %arg1, %c0_i32_18 : i32
    %25 = arith.extui %24 : i1 to i32
    %c0_i32_19 = arith.constant 0 : i32
    %26 = arith.cmpi ne, %25, %c0_i32_19 : i32
    scf.if %26 {
      %c0_20 = arith.constant 0 : index
      %c0_21 = arith.constant 0 : index
      %27 = vector.load %arg9[%c0_20, %c0_21] : memref<8x128xf32, #tpu.memory_space<vmem>>, vector<8x128xf32>
      %c0_22 = arith.constant 0 : index
      %c0_23 = arith.constant 0 : index
      %28 = vector.load %arg7[%c0_22, %c0_23] : memref<1x128xf32, #tpu.memory_space<vmem>>, vector<1x128xf32>
      %29 = vector.broadcast %28 : vector<1x128xf32> to vector<8x128xf32>
      %30 = arith.addf %27, %29 : vector<8x128xf32>
      %c0_24 = arith.constant 0 : index
      %c0_25 = arith.constant 0 : index
      %31 = vector.load %arg8[%c0_24, %c0_25] : memref<8x128xf32, #tpu.memory_space<vmem>>, vector<8x128xf32>
      tpu.vector_store %arg8[%c0_24, %c0_25], %30 {strides = array<i32>} : memref<8x128xf32, #tpu.memory_space<vmem>>, vector<8x128xf32>,
    } else {
    }
    return
  }
  func.func @transform_0(%arg0: i32, %arg1: i32) -> (i32, i32) {
    %c0_i32 = arith.constant 0 : i32
    %c0_i32_0 = arith.constant 0 : i32
    return %arg0, %c0_i32 : i32, i32
  }
  func.func @transform_1(%arg0: i32, %arg1: i32) -> (i32, i32) {
    %c0_i32 = arith.constant 0 : i32
    %c0_i32_0 = arith.constant 0 : i32
    return %c0_i32, %arg1 : i32, i32
  }
  func.func @transform_2(%arg0: i32, %arg1: i32) -> (i32, i32) {
    %c0_i32 = arith.constant 0 : i32
    %c0_i32_0 = arith.constant 0 : i32
    return %c0_i32, %arg1 : i32, i32
  }
  func.func @transform_3(%arg0: i32, %arg1: i32) -> (i32, i32) {
    %c0_i32 = arith.constant 0 : i32
    %c0_i32_0 = arith.constant 0 : i32
    return %c0_i32, %arg1 : i32, i32
  }
  func.func @transform_4(%arg0: i32, %arg1: i32) -> (i32, i32) {
    %c0_i32 = arith.constant 0 : i32
    %c0_i32_0 = arith.constant 0 : i32
    return %arg1, %c0_i32 : i32, i32
  }
  func.func @transform_5(%arg0: i32, %arg1: i32) -> (i32, i32) {
    %c0_i32 = arith.constant 0 : i32
    %c0_i32_0 = arith.constant 0 : i32
    %c0_i32_1 = arith.constant 0 : i32
    return %c0_i32, %c0_i32_0 : i32, i32
  }
  func.func @transform_6(%arg0: i32, %arg1: i32) -> (i32, i32) {
    %c0_i32 = arith.constant 0 : i32
    %c0_i32_0 = arith.constant 0 : i32
    return %arg0, %c0_i32 : i32, i32
  }
}

module attributes {stable_mosaic.version = 11 : i64} {
  func.func @_rbf_kernel(%arg0: i32, %arg1: i32, %arg2: memref<8x8xf32, #tpu.memory_space<vmem>>, %arg3: memref<8x128xf32, #tpu.memory_space<vmem>>, %arg4: memref<1x128xf32, #tpu.memory_space<vmem>>, %arg5: memref<1x128xf32, #tpu.memory_space<vmem>>, %arg6: memref<128x128xbf16, #tpu.memory_space<vmem>>, %arg7: memref<1x128xf32, #tpu.memory_space<vmem>>, %arg8: memref<8x128xf32, #tpu.memory_space<vmem>>, %arg9: memref<8x128xf32, #tpu.memory_space<vmem>>, %arg10: memref<8x1xf32, #tpu.memory_space<vmem>>) attributes {dimension_semantics = [#tpu.dimension_semantics<parallel>, #tpu.dimension_semantics<arbitrary>], iteration_bounds = array<i64: 1, 1>, scalar_prefetch = 0 : i64, scratch_operands = 2 : i64, tpu.core_type = #tpu.core_type<tc>, window_params = [{transform_indices = @transform_0, window_bounds = array<i64: 8, 8>}, {transform_indices = @transform_1, window_bounds = array<i64: 8, 128>}, {transform_indices = @transform_2, window_bounds = array<i64: 1, 128>}, {transform_indices = @transform_3, window_bounds = array<i64: 1, 128>}, {transform_indices = @transform_4, window_bounds = array<i64: 128, 128>}, {pipeline_mode = #tpu.pipeline_mode<synchronous>, transform_indices = @transform_5, window_bounds = array<i64: 1, 128>}, {transform_indices = @transform_6, window_bounds = array<i64: 8, 128>}]} {
    %c0_i32 = arith.constant 0 : i32
    %0 = arith.cmpi eq, %arg1, %c0_i32 : i32
    %1 = arith.extui %0 : i1 to i32
    %c0_i32_0 = arith.constant 0 : i32
    %2 = arith.cmpi ne, %1, %c0_i32_0 : i32
    scf.if %2 {
      %c0_20 = arith.constant 0 : index
      %c0_21 = arith.constant 0 : index
      %27 = vector.load %arg2[%c0_20, %c0_21] : memref<8x8xf32, #tpu.memory_space<vmem>>, vector<8x8xf32>
      %28 = arith.mulf %27, %27 : vector<8x8xf32>
      %cst_22 = arith.constant dense<0.000000e+00> : vector<8xf32>
      %29 = vector.multi_reduction <add>, %28, %cst_22 [1] : vector<8x8xf32> to vector<8xf32>
      %30 = vector.shape_cast %29 : vector<8xf32> to vector<8x1xf32>
      %c0_23 = arith.constant 0 : index
      %c0_24 = arith.constant 0 : index
      %31 = vector.load %arg10[%c0_23, %c0_24] : memref<8x1xf32, #tpu.memory_space<vmem>>, vector<8x1xf32>
      tpu.vector_store %arg10[%c0_23, %c0_24], %30 {strides = array<i32>} : memref<8x1xf32, #tpu.memory_space<vmem>>, vector<8x1xf32>,
      %cst_25 = arith.constant 0.000000e+00 : f32
      %32 = vector.broadcast %cst_25 : f32 to vector<8x128xf32>
      %c0_26 = arith.constant 0 : index
      %c0_27 = arith.constant 0 : index
      %33 = vector.load %arg9[%c0_26, %c0_27] : memref<8x128xf32, #tpu.memory_space<vmem>>, vector<8x128xf32>
      tpu.vector_store %arg9[%c0_26, %c0_27], %32 {strides = array<i32>} : memref<8x128xf32, #tpu.memory_space<vmem>>, vector<8x128xf32>,
    } else {
    }
    %c0 = arith.constant 0 : index
    %c0_1 = arith.constant 0 : index
    %3 = vector.load %arg2[%c0, %c0_1] : memref<8x8xf32, #tpu.memory_space<vmem>>, vector<8x8xf32>
    %c0_2 = arith.constant 0 : index
    %c0_3 = arith.constant 0 : index
    %4 = vector.load %arg3[%c0_2, %c0_3] : memref<8x128xf32, #tpu.memory_space<vmem>>, vector<8x128xf32>
    %cst = arith.constant dense<0.000000e+00> : vector<8x128xf32>
    %5 = tpu.matmul %3, %4, %cst {dimension_numbers = #tpu.dot_dimension_numbers<[1], [0], [0], [1], [0, 0, 1, 1], [], []>} : vector<8x8xf32>, vector<8x128xf32>, vector<8x128xf32> -> vector<8x128xf32>
    %c0_4 = arith.constant 0 : index
    %c0_5 = arith.constant 0 : index
    %6 = vector.load %arg10[%c0_4, %c0_5] : memref<8x1xf32, #tpu.memory_space<vmem>>, vector<8x1xf32>
    %7 = vector.broadcast %6 : vector<8x1xf32> to vector<8x128xf32>
    %8 = arith.addf %7, %5 : vector<8x128xf32>
    %c0_6 = arith.constant 0 : index
    %c0_7 = arith.constant 0 : index
    %9 = vector.load %arg4[%c0_6, %c0_7] : memref<1x128xf32, #tpu.memory_space<vmem>>, vector<1x128xf32>
    %10 = vector.broadcast %9 : vector<1x128xf32> to vector<8x128xf32>
    %11 = arith.addf %8, %10 : vector<8x128xf32>
    %cst_8 = arith.constant 0.000000e+00 : f32
    %12 = vector.broadcast %cst_8 : f32 to vector<8x128xf32>
    %13 = arith.maximumf %11, %12 : vector<8x128xf32>
    %c0_9 = arith.constant 0 : index
    %c0_10 = arith.constant 0 : index
    %14 = vector.load %arg5[%c0_9, %c0_10] : memref<1x128xf32, #tpu.memory_space<vmem>>, vector<1x128xf32>
    %15 = vector.broadcast %14 : vector<1x128xf32> to vector<8x128xf32>
    %16 = arith.mulf %15, %13 : vector<8x128xf32>
    %17 = math.exp %16 : vector<8x128xf32>
    %c0_11 = arith.constant 0 : index
    %c0_12 = arith.constant 0 : index
    %18 = vector.load %arg9[%c0_11, %c0_12] : memref<8x128xf32, #tpu.memory_space<vmem>>, vector<8x128xf32>
    %19 = arith.truncf %17 : vector<8x128xf32> to vector<8x128xbf16>
    %c0_13 = arith.constant 0 : index
    %c0_14 = arith.constant 0 : index
    %20 = vector.load %arg6[%c0_13, %c0_14] : memref<128x128xbf16, #tpu.memory_space<vmem>>, vector<128x128xbf16>
    %cst_15 = arith.constant dense<0.000000e+00> : vector<8x128xf32>
    %21 = tpu.matmul %19, %20, %cst_15 {dimension_numbers = #tpu.dot_dimension_numbers<[1], [0], [0], [1], [0, 0, 1, 1], [], []>} : vector<8x128xbf16>, vector<128x128xbf16>, vector<8x128xf32> -> vector<8x128xf32>
    %22 = arith.addf %18, %21 : vector<8x128xf32>
    %c0_16 = arith.constant 0 : index
    %c0_17 = arith.constant 0 : index
    %23 = vector.load %arg9[%c0_16, %c0_17] : memref<8x128xf32, #tpu.memory_space<vmem>>, vector<8x128xf32>
    tpu.vector_store %arg9[%c0_16, %c0_17], %22 {strides = array<i32>} : memref<8x128xf32, #tpu.memory_space<vmem>>, vector<8x128xf32>,
    %c0_i32_18 = arith.constant 0 : i32
    %24 = arith.cmpi eq, %arg1, %c0_i32_18 : i32
    %25 = arith.extui %24 : i1 to i32
    %c0_i32_19 = arith.constant 0 : i32
    %26 = arith.cmpi ne, %25, %c0_i32_19 : i32
    scf.if %26 {
      %c0_20 = arith.constant 0 : index
      %c0_21 = arith.constant 0 : index
      %27 = vector.load %arg9[%c0_20, %c0_21] : memref<8x128xf32, #tpu.memory_space<vmem>>, vector<8x128xf32>
      %c0_22 = arith.constant 0 : index
      %c0_23 = arith.constant 0 : index
      %28 = vector.load %arg7[%c0_22, %c0_23] : memref<1x128xf32, #tpu.memory_space<vmem>>, vector<1x128xf32>
      %29 = vector.broadcast %28 : vector<1x128xf32> to vector<8x128xf32>
      %30 = arith.addf %27, %29 : vector<8x128xf32>
      %c0_24 = arith.constant 0 : index
      %c0_25 = arith.constant 0 : index
      %31 = vector.load %arg8[%c0_24, %c0_25] : memref<8x128xf32, #tpu.memory_space<vmem>>, vector<8x128xf32>
      tpu.vector_store %arg8[%c0_24, %c0_25], %30 {strides = array<i32>} : memref<8x128xf32, #tpu.memory_space<vmem>>, vector<8x128xf32>,
    } else {
    }
    return
  }
  func.func @transform_0(%arg0: i32, %arg1: i32) -> (i32, i32) {
    %c0_i32 = arith.constant 0 : i32
    %c0_i32_0 = arith.constant 0 : i32
    return %arg0, %c0_i32 : i32, i32
  }
  func.func @transform_1(%arg0: i32, %arg1: i32) -> (i32, i32) {
    %c0_i32 = arith.constant 0 : i32
    %c0_i32_0 = arith.constant 0 : i32
    return %c0_i32, %arg1 : i32, i32
  }
  func.func @transform_2(%arg0: i32, %arg1: i32) -> (i32, i32) {
    %c0_i32 = arith.constant 0 : i32
    %c0_i32_0 = arith.constant 0 : i32
    return %c0_i32, %arg1 : i32, i32
  }
  func.func @transform_3(%arg0: i32, %arg1: i32) -> (i32, i32) {
    %c0_i32 = arith.constant 0 : i32
    %c0_i32_0 = arith.constant 0 : i32
    return %c0_i32, %arg1 : i32, i32
  }
  func.func @transform_4(%arg0: i32, %arg1: i32) -> (i32, i32) {
    %c0_i32 = arith.constant 0 : i32
    %c0_i32_0 = arith.constant 0 : i32
    return %arg1, %c0_i32 : i32, i32
  }
  func.func @transform_5(%arg0: i32, %arg1: i32) -> (i32, i32) {
    %c0_i32 = arith.constant 0 : i32
    %c0_i32_0 = arith.constant 0 : i32
    %c0_i32_1 = arith.constant 0 : i32
    return %c0_i32, %c0_i32_0 : i32, i32
  }
  func.func @transform_6(%arg0: i32, %arg1: i32) -> (i32, i32) {
    %c0_i32 = arith.constant 0 : i32
    %c0_i32_0 = arith.constant 0 : i32
    return %arg0, %c0_i32 : i32, i32
  }
}

</mosaic_0001>

<bundles_post_ra>
// kernel: tpu_custom_call.1
= control target key start
LH: loop header
LB: loop body
LE: loop exit
PB: predicated region body
PF: predicated region fallthrough
CT: control target
= control target key end

     0   :  { %11 = vsyncpa [#allocation5], 0  ;;  %s577_s0 = inlined_call_operand.hbm [shape: f32[8,8], index: 0, kind: input, shape index: {}]   ;;  %s578_s1 = inlined_call_operand.hbm [shape: f32[8,128], index: 1, kind: input, shape index: {}]   ;;  %s579_s2 = inlined_call_operand.vmem [shape: f32[1,128], index: 2, kind: input, shape index: {}]   ;;  %s580_s3 = inlined_call_operand.vmem [shape: f32[1,128], index: 3, kind: input, shape index: {}]   ;;  %s581_s4 = inlined_call_operand.hbm [shape: bf16[128,128], index: 4, kind: input, shape index: {}]   ;;  %s582_s5 = inlined_call_operand.vmem [shape: f32[1,128], index: 5, kind: input, shape index: {}]   ;;  %s583_s6 = inlined_call_operand.hbm [shape: f32[8,128], index: 6, kind: output, shape index: {}]  }
   0x1   :  { %12 = vsyncpa [#allocation8], 0 }
   0x2   :  { %13 = vsyncpa [#allocation6], 0  ;;  %s476_s21 = smov [#allocation7]   ;;  %s477_s23 = smov [#allocation4]  }
   0x3   :  { %s30_s22 = sshll.u32 %s476_s21, 4  ;;  %s20_s24 = sshll.u32 %s477_s23, 4  ;;  %s31_s22 = int_to_ptr.vmem [resolvable:$true] %s30_s22  ;;  %s21_s24 = int_to_ptr.vmem [resolvable:$true] %s20_s24 }
   0x4   :  { %s382_s27 = scalar_lea.hbm %s578_s1, 128 }
   0x5   :  { %p383_p0 = scmp.ne.s32.totalorder %s578_s1, %s382_s27  ;;  %p386_p1 = scmp.lt.u32.totalorder %s382_s27, %s578_s1 }
   0x7   :  { %p388_p2 = pnand %p386_p1, %p383_p0 }
   0x9   :  { %391 = shalt.err (!%p388_p2)
}
   0xa   :  { %s392_s8 = scalar_lea.vmem %s31_s22, 128  ;;  %p397_p4 = scmp.lt.s32.totalorder %s31_s22, %s31_s22 }
   0xb   :  { %p393_p3 = scmp.ne.s32.totalorder %s31_s22, %s392_s8  ;;  %p398_p5 = scmp.lt.s32.totalorder %s392_s8, %s392_s8 }
   0xd   :  { %p399_p6 = por %p398_p5, %p397_p4 }
   0xf   :  { %p400_p7 = pnand %p399_p6, %p393_p3 }
  0x11   :  { %403 = shalt.err (!%p400_p7)
}
  0x12   :  { %33 = dma.hbm_to_vmem [thread:$0]  %s578_s1, 128, %s31_s22, [#allocation8]  }
  0x13   :  { %s404_s13 = scalar_lea.hbm %s577_s0, 128 }
  0x14   :  { %p405_p8 = scmp.ne.s32.totalorder %s577_s0, %s404_s13  ;;  %p408_p9 = scmp.lt.u32.totalorder %s404_s13, %s577_s0 }
  0x16   :  { %p410_p10 = pnand %p408_p9, %p405_p8 }
  0x18   :  { %413 = shalt.err (!%p410_p10)
}
  0x19   :  { %s414_s18 = scalar_lea.vmem %s21_s24, 128  ;;  %p419_p12 = scmp.lt.s32.totalorder %s21_s24, %s21_s24 }
  0x1a   :  { %p415_p11 = scmp.ne.s32.totalorder %s21_s24, %s414_s18  ;;  %p420_p13 = scmp.lt.s32.totalorder %s414_s18, %s414_s18 }
  0x1c   :  { %p421_p0 = por %p420_p13, %p419_p12 }
  0x1e   :  { %p422_p1 = pnand %p421_p0, %p415_p11 }
  0x20   :  { %425 = shalt.err (!%p422_p1)
}
  0x21   :  { %23 = dma.hbm_to_vmem [thread:$0]  %s577_s0, 128, %s21_s24, [#allocation5]  }
  0x22   :  { %s478_s20 = smov [#allocation9]   ;;  %s426_s25 = scalar_lea.hbm %s581_s4, 1024 }
  0x23   :  { %s43_s21 = sshll.u32 %s478_s20, 4  ;;  %p427_p2 = scmp.ne.s32.totalorder %s581_s4, %s426_s25  ;;  %s44_s21 = int_to_ptr.vmem [resolvable:$true] %s43_s21 }
  0x24   :  { %p430_p3 = scmp.lt.u32.totalorder %s426_s25, %s581_s4 }
  0x26   :  { %p432_p4 = pnand %p430_p3, %p427_p2 }
  0x28   :  { %435 = shalt.err (!%p432_p4)
}
  0x29   :  { %s436_s30 = scalar_lea.vmem %s44_s21, 1024  ;;  %p441_p6 = scmp.lt.s32.totalorder %s44_s21, %s44_s21 }
  0x2a   :  { %p437_p5 = scmp.ne.s32.totalorder %s44_s21, %s436_s30  ;;  %p442_p7 = scmp.lt.s32.totalorder %s436_s30, %s436_s30 }
  0x2c   :  { %p443_p8 = por %p442_p7, %p441_p6 }
  0x2e   :  { %p444_p9 = pnand %p443_p8, %p437_p5 }
  0x30   :  { %447 = shalt.err (!%p444_p9)
}
  0x31   :  { %s479_s0 = smov 64   ;;  %s480_s24 = smov 4  }
  0x32   :  { %49 = dma.hbm_to_vmem [thread:$0]  %s581_s4, 1024, %s44_s21, [#allocation8], %s479_s0, %s479_s0, %s480_s24  }
  0x33   :  { %470 = dma.done.wait [#allocation5], 128  }
  0x34   :  { %471 = vsyncadd [#allocation5], 4294967168 }
  0x35   :  { %472 = dma.done.wait [#allocation8], 1152  }
  0x36   :  { %473 = vsyncadd [#allocation8], 4294966144  ;;  %v481_v0 = vmov 0.0   ;;  %vm482_vm0 = vmmov 0   ;;  %v66_v1 = vld [vmem:[#allocation4] sm:$0xff]  ;;  %vm68_vm1 = vcmask 64512  }
  0x37   :  { %337 = vmatprep.subr.mxu0 %v481_v0  ;;  %339 = vmatprep.mubr.msk.f32.mxu0 %vm482_vm0, %v481_v0  ;;  %v76_v2 = vld [vmem:[#allocation7] sm:$0xff]  ;;  %v67_v3 = vmul.f32 %v66_v1, %v66_v1  ;;  %v483_v5 = vmov 0   ;;  %v372_v6 = vld [vmem:[#allocation9] sm:$0xff]   ;;  %v373_v7 = vld [vmem:[#allocation9 + $0x8] sm:$0xff]   ;;  %vm72_vm2 = vcmask 7168   ;;  %s484_s14 = smov [#allocation10]  }
  0x38   :  { %342 = vmatprep.subr.bf16.mxu1 %v481_v0  ;;  %358 = vmatprep.mubr.msk.bf16.mxu1 %vm482_vm0, %v481_v0  ;;  %v374_v9 = vld [vmem:[#allocation9 + $0x10] sm:$0xff]   ;;  %v375_v11 = vld [vmem:[#allocation9 + $0x18] sm:$0xff]   ;;  %v376_v12 = vld [vmem:[#allocation9 + $0x20] sm:$0xff]  }
  0x39   :  { %338 = vmatpush3.msra.mxu0 %v76_v2  ;;  %v69_v4 = vsel %vm68_vm1, %v67_v3, 0.0  ;;  %371 = vset.pattern.permute.xlu0 %v483_v5  ;;  %v377_v13 = vld [vmem:[#allocation9 + $0x28] sm:$0xff]   ;;  %v378_v14 = vld [vmem:[#allocation9 + $0x30] sm:$0xff]   ;;  %v379_v15 = vld [vmem:[#allocation9 + $0x38] sm:$0xff]  }
  0x3a   :  { %340 = vmatmul.mubr.msk.f32.vlgmr.msra.gmra.mrb[0].mxu0 %vm68_vm1, %v66_v1  ;;  %70 = vadd.xlane.f32.xlu0 %v69_v4  ;;  %v315_v18 = vld [vmem:[%s579_s2] ss:$0 sm:$0xff]  ;;  %s304_s2 = sshll.u32 %s484_s14, 4  ;;  %s305_s2 = int_to_ptr.vmem [resolvable:$true] %s304_s2 }
  0x3b   :  { %343 = vmatpush3.bf16.msra.mxu1 %v372_v6  ;;  %v316_v22 = vld [vmem:[%s580_s3] ss:$0 sm:$0xff]  ;;  %s448_s3 = scalar_lea.vmem %s305_s2, 128  ;;  %p453_p11 = scmp.lt.s32.totalorder %s305_s2, %s305_s2 }
  0x3c   :  { %344 = vmatprep.subr.bf16.mxu1 %v481_v0  ;;  %v325_v28 = vld [vmem:[%s582_s5] ss:$0 sm:$0xff]  ;;  %p449_p10 = scmp.ne.s32.totalorder %s305_s2, %s448_s3  ;;  %p454_p12 = scmp.lt.s32.totalorder %s448_s3, %s448_s3 }
  0x3e   :  { %p455_p13 = por %p454_p12, %p453_p11 }
  0x3f   :  { %345 = vmatpush3.bf16.msra.mxu1 %v373_v7 }
  0x40   :  { %346 = vmatprep.subr.bf16.mxu1 %v481_v0  ;;  %p456_p0 = pnand %p455_p13, %p449_p10 }
  0x43   :  { %347 = vmatpush3.bf16.msra.mxu1 %v374_v9 }
  0x44   :  { %348 = vmatprep.subr.bf16.mxu1 %v481_v0 }
  0x47   :  { %349 = vmatpush3.bf16.msra.mxu1 %v375_v11 }
  0x48   :  { %350 = vmatprep.subr.bf16.mxu1 %v481_v0 }
  0x4b   :  { %351 = vmatpush3.bf16.msra.mxu1 %v376_v12 }
  0x4c   :  { %352 = vmatprep.subr.bf16.mxu1 %v481_v0 }
  0x4f   :  { %353 = vmatpush3.bf16.msra.mxu1 %v377_v13 }
  0x50   :  { %354 = vmatprep.subr.bf16.mxu1 %v481_v0 }
  0x53   :  { %355 = vmatpush3.bf16.msra.mxu1 %v378_v14 }
  0x54   :  { %356 = vmatprep.subr.bf16.mxu1 %v481_v0 }
  0x57   :  { %357 = vmatpush3.bf16.msra.mxu1 %v379_v15 }
  0xc7   :  { %v71_v8 = vpop.xlane.xlu0 %70 }
  0xc8   :  { %73 = vst.msk [vmem:[#allocation3] sm:$0xff] %vm72_vm2, %v71_v8 }
  0xcf   :  { %v151_v10 = vld [vmem:[#allocation3] sm:$0xff] }
  0xd0   :  { %154 = vperm.xlu0 %371, %v151_v10  }
 0x10d   :  { %v147_v16 = vpop.f32.mrb[0].mxu0 }
 0x10e   :  { %v341_v17 = vpop.f32.mrb[1].mxu0 }
 0x14f   :  { %v155_v19 = vpop.permute.xlu0 %154 }
 0x150   :  { %v157_v20 = vadd.f32 %v155_v19, %v147_v16 }
 0x152   :  { %v165_v21 = vadd.f32 %v315_v18, %v157_v20 }
 0x154   :  { %v166_v23 = vmax.f32 %v165_v21, 0.0 }
 0x156   :  { %v174_v24 = vmul.f32 %v316_v22, %v166_v23 }
 0x158   :  { %v175_v25 = vmul.f32 1.442695, %v174_v24 }
 0x15a   :  { %380 = vpow2.f32 %v175_v25 }
 0x164   :  { %v381_v26 = vpop.eup %380 }
 0x165   :  { %v178_v27 = vpack.c.bf16 %v381_v26, %v381_v26 }
 0x167   :  { %359 = vmatmul.mubr.bf16.vlgmr.msra.gmra.mrb[0].mxu1 %v178_v27 }
 0x23a   :  { %v277_v29 = vpop.f32.mrb[0].mxu1 }
 0x23b   :  { %v296_v30 = vadd.f32 %v325_v28, %v277_v29  ;;  %v360_v31 = vpop.f32.mrb[1].mxu1 }
 0x23c   :  { %v280_v32 = vpop.f32.mrb[2].mxu1 }
 0x23d   :  { %297 = vst [vmem:[#allocation10] sm:$0xff] %v296_v30  ;;  %v361_v33 = vpop.f32.mrb[3].mxu1 }
 0x23e   :  { %459 = shalt.err (!%p456_p0)
}
 0x23f   :  { %s460_s5 = scalar_lea.hbm %s583_s6, 128 }
 0x240   :  { %p461_p1 = scmp.ne.s32.totalorder %s583_s6, %s460_s5  ;;  %p464_p2 = scmp.lt.u32.totalorder %s460_s5, %s583_s6 }
 0x242   :  { %p466_p3 = pnand %p464_p2, %p461_p1 }
 0x244   :  { %469 = shalt.err (!%p466_p3)
}
 0x245   :  { %307 = dma.vmem_to_hbm [thread:$0]  %s305_s2, 128, %s583_s6, [#allocation6]  }
 0x246   :  { %474 = dma.done.wait [#allocation6], 128  }
 0x247   :  { %475 = vsyncadd [#allocation6], 4294967168 }
 0x248   :  { %311 = vsyncpa [#allocation5], 1 }
 0x249   :  { %312 = vsyncpa [#allocation8], 1 }
 0x24a   :  { %313 = vsyncpa [#allocation6], 1 }

// kernel: tpu_custom_call.1
= control target key start
LH: loop header
LB: loop body
LE: loop exit
PB: predicated region body
PF: predicated region fallthrough
CT: control target
= control target key end

     0   :  { %11 = vsyncpa [#allocation5], 0  ;;  %s577_s0 = inlined_call_operand.hbm [shape: f32[8,8], index: 0, kind: input, shape index: {}]   ;;  %s578_s1 = inlined_call_operand.hbm [shape: f32[8,128], index: 1, kind: input, shape index: {}]   ;;  %s579_s2 = inlined_call_operand.vmem [shape: f32[1,128], index: 2, kind: input, shape index: {}]   ;;  %s580_s3 = inlined_call_operand.vmem [shape: f32[1,128], index: 3, kind: input, shape index: {}]   ;;  %s581_s4 = inlined_call_operand.hbm [shape: bf16[128,128], index: 4, kind: input, shape index: {}]   ;;  %s582_s5 = inlined_call_operand.vmem [shape: f32[1,128], index: 5, kind: input, shape index: {}]   ;;  %s583_s6 = inlined_call_operand.hbm [shape: f32[8,128], index: 6, kind: output, shape index: {}]  }
   0x1   :  { %12 = vsyncpa [#allocation8], 0 }
   0x2   :  { %13 = vsyncpa [#allocation6], 0  ;;  %s476_s21 = smov [#allocation7]   ;;  %s477_s23 = smov [#allocation4]  }
   0x3   :  { %s30_s22 = sshll.u32 %s476_s21, 4  ;;  %s20_s24 = sshll.u32 %s477_s23, 4  ;;  %s31_s22 = int_to_ptr.vmem [resolvable:$true] %s30_s22  ;;  %s21_s24 = int_to_ptr.vmem [resolvable:$true] %s20_s24 }
   0x4   :  { %s382_s27 = scalar_lea.hbm %s578_s1, 128 }
   0x5   :  { %p383_p0 = scmp.ne.s32.totalorder %s578_s1, %s382_s27  ;;  %p386_p1 = scmp.lt.u32.totalorder %s382_s27, %s578_s1 }
   0x7   :  { %p388_p2 = pnand %p386_p1, %p383_p0 }
   0x9   :  { %391 = shalt.err (!%p388_p2)
}
   0xa   :  { %s392_s8 = scalar_lea.vmem %s31_s22, 128  ;;  %p397_p4 = scmp.lt.s32.totalorder %s31_s22, %s31_s22 }
   0xb   :  { %p393_p3 = scmp.ne.s32.totalorder %s31_s22, %s392_s8  ;;  %p398_p5 = scmp.lt.s32.totalorder %s392_s8, %s392_s8 }
   0xd   :  { %p399_p6 = por %p398_p5, %p397_p4 }
   0xf   :  { %p400_p7 = pnand %p399_p6, %p393_p3 }
  0x11   :  { %403 = shalt.err (!%p400_p7)
}
  0x12   :  { %33 = dma.hbm_to_vmem [thread:$0]  %s578_s1, 128, %s31_s22, [#allocation8]  }
  0x13   :  { %s404_s13 = scalar_lea.hbm %s577_s0, 128 }
  0x14   :  { %p405_p8 = scmp.ne.s32.totalorder %s577_s0, %s404_s13  ;;  %p408_p9 = scmp.lt.u32.totalorder %s404_s13, %s577_s0 }
  0x16   :  { %p410_p10 = pnand %p408_p9, %p405_p8 }
  0x18   :  { %413 = shalt.err (!%p410_p10)
}
  0x19   :  { %s414_s18 = scalar_lea.vmem %s21_s24, 128  ;;  %p419_p12 = scmp.lt.s32.totalorder %s21_s24, %s21_s24 }
  0x1a   :  { %p415_p11 = scmp.ne.s32.totalorder %s21_s24, %s414_s18  ;;  %p420_p13 = scmp.lt.s32.totalorder %s414_s18, %s414_s18 }
  0x1c   :  { %p421_p0 = por %p420_p13, %p419_p12 }
  0x1e   :  { %p422_p1 = pnand %p421_p0, %p415_p11 }
  0x20   :  { %425 = shalt.err (!%p422_p1)
}
  0x21   :  { %23 = dma.hbm_to_vmem [thread:$0]  %s577_s0, 128, %s21_s24, [#allocation5]  }
  0x22   :  { %s478_s20 = smov [#allocation9]   ;;  %s426_s25 = scalar_lea.hbm %s581_s4, 1024 }
  0x23   :  { %s43_s21 = sshll.u32 %s478_s20, 4  ;;  %p427_p2 = scmp.ne.s32.totalorder %s581_s4, %s426_s25  ;;  %s44_s21 = int_to_ptr.vmem [resolvable:$true] %s43_s21 }
  0x24   :  { %p430_p3 = scmp.lt.u32.totalorder %s426_s25, %s581_s4 }
  0x26   :  { %p432_p4 = pnand %p430_p3, %p427_p2 }
  0x28   :  { %435 = shalt.err (!%p432_p4)
}
  0x29   :  { %s436_s30 = scalar_lea.vmem %s44_s21, 1024  ;;  %p441_p6 = scmp.lt.s32.totalorder %s44_s21, %s44_s21 }
  0x2a   :  { %p437_p5 = scmp.ne.s32.totalorder %s44_s21, %s436_s30  ;;  %p442_p7 = scmp.lt.s32.totalorder %s436_s30, %s436_s30 }
  0x2c   :  { %p443_p8 = por %p442_p7, %p441_p6 }
  0x2e   :  { %p444_p9 = pnand %p443_p8, %p437_p5 }
  0x30   :  { %447 = shalt.err (!%p444_p9)
}
  0x31   :  { %s479_s0 = smov 64   ;;  %s480_s24 = smov 4  }
  0x32   :  { %49 = dma.hbm_to_vmem [thread:$0]  %s581_s4, 1024, %s44_s21, [#allocation8], %s479_s0, %s479_s0, %s480_s24  }
  0x33   :  { %470 = dma.done.wait [#allocation5], 128  }
  0x34   :  { %471 = vsyncadd [#allocation5], 4294967168 }
  0x35   :  { %472 = dma.done.wait [#allocation8], 1152  }
  0x36   :  { %473 = vsyncadd [#allocation8], 4294966144  ;;  %v481_v0 = vmov 0.0   ;;  %vm482_vm0 = vmmov 0   ;;  %v66_v1 = vld [vmem:[#allocation4] sm:$0xff]  ;;  %vm68_vm1 = vcmask 64512  }
  0x37   :  { %337 = vmatprep.subr.mxu0 %v481_v0  ;;  %339 = vmatprep.mubr.msk.f32.mxu0 %vm482_vm0, %v481_v0  ;;  %v76_v2 = vld [vmem:[#allocation7] sm:$0xff]  ;;  %v67_v3 = vmul.f32 %v66_v1, %v66_v1  ;;  %v483_v5 = vmov 0   ;;  %v372_v6 = vld [vmem:[#allocation9] sm:$0xff]   ;;  %v373_v7 = vld [vmem:[#allocation9 + $0x8] sm:$0xff]   ;;  %vm72_vm2 = vcmask 7168   ;;  %s484_s14 = smov [#allocation10]  }
  0x38   :  { %342 = vmatprep.subr.bf16.mxu1 %v481_v0  ;;  %358 = vmatprep.mubr.msk.bf16.mxu1 %vm482_vm0, %v481_v0  ;;  %v374_v9 = vld [vmem:[#allocation9 + $0x10] sm:$0xff]   ;;  %v375_v11 = vld [vmem:[#allocation9 + $0x18] sm:$0xff]   ;;  %v376_v12 = vld [vmem:[#allocation9 + $0x20] sm:$0xff]  }
  0x39   :  { %338 = vmatpush3.msra.mxu0 %v76_v2  ;;  %v69_v4 = vsel %vm68_vm1, %v67_v3, 0.0  ;;  %371 = vset.pattern.permute.xlu0 %v483_v5  ;;  %v377_v13 = vld [vmem:[#allocation9 + $0x28] sm:$0xff]   ;;  %v378_v14 = vld [vmem:[#allocation9 + $0x30] sm:$0xff]   ;;  %v379_v15 = vld [vmem:[#allocation9 + $0x38] sm:$0xff]  }
  0x3a   :  { %340 = vmatmul.mubr.msk.f32.vlgmr.msra.gmra.mrb[0].mxu0 %vm68_vm1, %v66_v1  ;;  %70 = vadd.xlane.f32.xlu0 %v69_v4  ;;  %v315_v18 = vld [vmem:[%s579_s2] ss:$0 sm:$0xff]  ;;  %s304_s2 = sshll.u32 %s484_s14, 4  ;;  %s305_s2 = int_to_ptr.vmem [resolvable:$true] %s304_s2 }
  0x3b   :  { %343 = vmatpush3.bf16.msra.mxu1 %v372_v6  ;;  %v316_v22 = vld [vmem:[%s580_s3] ss:$0 sm:$0xff]  ;;  %s448_s3 = scalar_lea.vmem %s305_s2, 128  ;;  %p453_p11 = scmp.lt.s32.totalorder %s305_s2, %s305_s2 }
  0x3c   :  { %344 = vmatprep.subr.bf16.mxu1 %v481_v0  ;;  %v325_v28 = vld [vmem:[%s582_s5] ss:$0 sm:$0xff]  ;;  %p449_p10 = scmp.ne.s32.totalorder %s305_s2, %s448_s3  ;;  %p454_p12 = scmp.lt.s32.totalorder %s448_s3, %s448_s3 }
  0x3e   :  { %p455_p13 = por %p454_p12, %p453_p11 }
  0x3f   :  { %345 = vmatpush3.bf16.msra.mxu1 %v373_v7 }
  0x40   :  { %346 = vmatprep.subr.bf16.mxu1 %v481_v0  ;;  %p456_p0 = pnand %p455_p13, %p449_p10 }
  0x43   :  { %347 = vmatpush3.bf16.msra.mxu1 %v374_v9 }
  0x44   :  { %348 = vmatprep.subr.bf16.mxu1 %v481_v0 }
  0x47   :  { %349 = vmatpush3.bf16.msra.mxu1 %v375_v11 }
  0x48   :  { %350 = vmatprep.subr.bf16.mxu1 %v481_v0 }
  0x4b   :  { %351 = vmatpush3.bf16.msra.mxu1 %v376_v12 }
  0x4c   :  { %352 = vmatprep.subr.bf16.mxu1 %v481_v0 }
  0x4f   :  { %353 = vmatpush3.bf16.msra.mxu1 %v377_v13 }
  0x50   :  { %354 = vmatprep.subr.bf16.mxu1 %v481_v0 }
  0x53   :  { %355 = vmatpush3.bf16.msra.mxu1 %v378_v14 }
  0x54   :  { %356 = vmatprep.subr.bf16.mxu1 %v481_v0 }
  0x57   :  { %357 = vmatpush3.bf16.msra.mxu1 %v379_v15 }
  0xc7   :  { %v71_v8 = vpop.xlane.xlu0 %70 }
  0xc8   :  { %73 = vst.msk [vmem:[#allocation3] sm:$0xff] %vm72_vm2, %v71_v8 }
  0xcf   :  { %v151_v10 = vld [vmem:[#allocation3] sm:$0xff] }
  0xd0   :  { %154 = vperm.xlu0 %371, %v151_v10  }
 0x10d   :  { %v147_v16 = vpop.f32.mrb[0].mxu0 }
 0x10e   :  { %v341_v17 = vpop.f32.mrb[1].mxu0 }
 0x14f   :  { %v155_v19 = vpop.permute.xlu0 %154 }
 0x150   :  { %v157_v20 = vadd.f32 %v155_v19, %v147_v16 }
 0x152   :  { %v165_v21 = vadd.f32 %v315_v18, %v157_v20 }
 0x154   :  { %v166_v23 = vmax.f32 %v165_v21, 0.0 }
 0x156   :  { %v174_v24 = vmul.f32 %v316_v22, %v166_v23 }
 0x158   :  { %v175_v25 = vmul.f32 1.442695, %v174_v24 }
 0x15a   :  { %380 = vpow2.f32 %v175_v25 }
 0x164   :  { %v381_v26 = vpop.eup %380 }
 0x165   :  { %v178_v27 = vpack.c.bf16 %v381_v26, %v381_v26 }
 0x167   :  { %359 = vmatmul.mubr.bf16.vlgmr.msra.gmra.mrb[0].mxu1 %v178_v27 }
 0x23a   :  { %v277_v29 = vpop.f32.mrb[0].mxu1 }
 0x23b   :  { %v296_v30 = vadd.f32 %v325_v28, %v277_v29  ;;  %v360_v31 = vpop.f32.mrb[1].mxu1 }
 0x23c   :  { %v280_v32 = vpop.f32.mrb[2].mxu1 }
 0x23d   :  { %297 = vst [vmem:[#allocation10] sm:$0xff] %v296_v30  ;;  %v361_v33 = vpop.f32.mrb[3].mxu1 }
 0x23e   :  { %459 = shalt.err (!%p456_p0)
}
 0x23f   :  { %s460_s5 = scalar_lea.hbm %s583_s6, 128 }
 0x240   :  { %p461_p1 = scmp.ne.s32.totalorder %s583_s6, %s460_s5  ;;  %p464_p2 = scmp.lt.u32.totalorder %s460_s5, %s583_s6 }
 0x242   :  { %p466_p3 = pnand %p464_p2, %p461_p1 }
 0x244   :  { %469 = shalt.err (!%p466_p3)
}
 0x245   :  { %307 = dma.vmem_to_hbm [thread:$0]  %s305_s2, 128, %s583_s6, [#allocation6]  }
 0x246   :  { %474 = dma.done.wait [#allocation6], 128  }
 0x247   :  { %475 = vsyncadd [#allocation6], 4294967168 }
 0x248   :  { %311 = vsyncpa [#allocation5], 1 }
 0x249   :  { %312 = vsyncpa [#allocation8], 1 }
 0x24a   :  { %313 = vsyncpa [#allocation6], 1 }

</bundles_post_ra>
